<compile_context>
chip_gen: v7x
topology: tpu7x:2x2x1
jax: 0.10.0
libtpu: 0.0.40
codegen_flags: <defaults>
</compile_context>

<pallas_src>
import functools
import math

import numpy as np
import jax
import jax.numpy as jnp
from jax.experimental import pallas as pl
from jax.experimental.pallas import tpu as pltpu

try:
    from scipy.optimize import linear_sum_assignment  # host-side, optional
except Exception:  # pragma: no cover
    linear_sum_assignment = None
    # TODO(synk): Hungarian matching (linear_sum_assignment) has no Pallas
    # equivalent; falling back to a greedy host-side assignment below.


def _round_up(x, m):
    return (x + m - 1) // m * m


# ---------------------------------------------------------------------------
# Pallas kernel: per-image matching cost C = w_m*CE + w_c*class + w_d*dice
# Grid = (B, num_point_chunks); point axis is the reduction ("arbitrary") axis.
# ---------------------------------------------------------------------------
def _matcher_cost_kernel(logits_ref, labels_ref, x_ref, tgt_ref, cost_ref,
                         acc2_ref, sp_ref, ssum_ref, tsum_ref, *,
                         w_class, w_mask, w_dice, num_points, num_pad):
    f32 = jnp.float32
    bf16 = jnp.bfloat16

    k = pl.program_id(1)
    nk = pl.num_programs(1)
    q_pad = x_ref.shape[1]

    @pl.when(k == 0)
    def _():
        acc2_ref[...] = jnp.zeros_like(acc2_ref)
        sp_ref[...] = jnp.zeros_like(sp_ref)
        ssum_ref[...] = jnp.zeros_like(ssum_ref)
        tsum_ref[...] = jnp.zeros_like(tsum_ref)

    # ---- current point chunk --------------------------------------------
    x_bf = x_ref[0]                       # (Qp, TP)  pred mask logits at points
    tgt_bf = tgt_ref[0]                   # (TP, Tp)  target mask at points
    x = x_bf.astype(f32)

    # softplus(x) and sigmoid(x) from a single exp(-|x|).
    t = jnp.exp(-jnp.abs(x))
    softplus_x = jnp.maximum(x, 0.0) + jnp.log(1.0 + t)       # = BCE(x, 0)
    r = pl.reciprocal(1.0 + t, approx=True)
    s = jnp.where(x >= 0.0, r, 1.0 - r)                        # sigmoid(x)

    # One fused MXU pass: [x ; sigmoid(x)] @ tgt  -> (2*Qp, Tp), f32 accumulate.
    lhs = jnp.concatenate([x_bf, s.astype(bf16)], axis=0)
    acc2_ref[...] += jnp.dot(lhs, tgt_bf, preferred_element_type=f32)

    # Row reductions (padded point columns corrected by constants at finalize).
    sp_ref[...] += jnp.sum(softplus_x, axis=-1, keepdims=True)         # (Qp,1)
    ssum_ref[...] += jnp.sum(s, axis=-1, keepdims=True)                # (Qp,1)
    tsum_ref[...] += jnp.sum(tgt_bf.astype(f32), axis=0, keepdims=True)  # (1,Tp)

    # ---- finalize on the last point chunk --------------------------------
    @pl.when(k == nk - 1)
    def _():
        # class cost: -softmax(logits)[:, tgt_ids]; one-hot built in-kernel.
        logits = logits_ref[0].astype(f32)                     # (Qp, C)
        labels = labels_ref[0]                                 # (1, Tp), -1 = pad
        num_cls = logits.shape[-1]
        t_pad = labels.shape[-1]
        z = logits - jnp.max(logits, axis=-1, keepdims=True)
        e = jnp.exp(z)
        inv_sum = 1.0 / jnp.sum(e, axis=-1, keepdims=True)     # exact (tiny)
        onehot = (jax.lax.broadcasted_iota(jnp.int32, (num_cls, t_pad), 0)
                  == labels).astype(f32)                       # (C, Tp)
        cost_class = -jnp.dot(e, onehot, preferred_element_type=f32) * inv_sum

        # remove the padded-column contributions from the row sums
        sp_sum = sp_ref[...] - num_pad * math.log(2.0)         # (Qp, 1)
        s_sum = ssum_ref[...] - num_pad * 0.5                  # (Qp, 1)

        acc2 = acc2_ref[...]
        xt = acc2[:q_pad, :]                                   # x @ tgt   (Qp,Tp)
        st = acc2[q_pad:, :]                                   # sig @ tgt (Qp,Tp)

        # sigmoid-CE cost: (rowsum(softplus(x)) - x@tgt^T) / num_points
        cost_mask = (sp_sum - xt) * (1.0 / num_points)

        # dice cost
        denom = s_sum + tsum_ref[...] + 1.0
        cost_dice = 1.0 - (2.0 * st + 1.0) * pl.reciprocal(denom, approx=True)

        total = w_mask * cost_mask + w_class * cost_class + w_dice * cost_dice
        cost_ref[0] = total.astype(cost_ref.dtype)


# ---------------------------------------------------------------------------
# Glue: 4-corner indices/weights (torch grid_sample semantics) + gather + call
# ---------------------------------------------------------------------------
def build_point_corners(point_coords, H, W):
    """point_coords: (B, P, 2) in [0,1], [...,0]=x (width), [...,1]=y (height).
    Returns flat corner indices (B, 4, P) int32 and weights (B, 4, P) f32
    matching F.grid_sample(2*p-1, align_corners=False, padding_mode='zeros')."""
    px = point_coords[..., 0] * W - 0.5
    py = point_coords[..., 1] * H - 0.5
    x0 = jnp.floor(px)
    y0 = jnp.floor(py)
    wx1 = px - x0
    wx0 = 1.0 - wx1
    wy1 = py - y0
    wy0 = 1.0 - wy1
    x0i = x0.astype(jnp.int32)
    y0i = y0.astype(jnp.int32)
    x1i = x0i + 1
    y1i = y0i + 1

    def corner(xi, yi, wgt):
        valid = ((xi >= 0) & (xi < W) & (yi >= 0) & (yi < H)).astype(wgt.dtype)
        xic = jnp.clip(xi, 0, W - 1)
        yic = jnp.clip(yi, 0, H - 1)
        return yic * W + xic, wgt * valid

    i00, w00 = corner(x0i, y0i, wx0 * wy0)
    i10, w10 = corner(x1i, y0i, wx1 * wy0)
    i01, w01 = corner(x0i, y1i, wx0 * wy1)
    i11, w11 = corner(x1i, y1i, wx1 * wy1)
    idx = jnp.stack([i00, i10, i01, i11], axis=1)   # (B, 4, P)
    wts = jnp.stack([w00, w10, w01, w11], axis=1)   # (B, 4, P)
    return idx, wts


def _sample_points(mask_flat, idx, wts):
    """Bilinear point sampling: gather 4 corners and combine (done by XLA).
    mask_flat: (B, N, HW), idx: (B, 4, P), wts: (B, 4, P) -> (B, N, P) f32."""
    def one(m, ib, wb):                      # m (N, HW), ib/wb (4, P)
        g = m[:, ib]                         # (N, 4, P) gather
        return jnp.einsum('ncp,cp->np', g, wb)
    return jax.vmap(one)(mask_flat.astype(jnp.float32), idx,
                         wts.astype(jnp.float32))


def matcher_cost(pred_logits, pred_masks, tgt_labels, tgt_masks, point_coords,
                 cost_class=1.0, cost_mask=1.0, cost_dice=1.0,
                 point_chunk=2048):
    B, Q, C = pred_logits.shape
    T = tgt_labels.shape[1]
    H, W = pred_masks.shape[-2:]
    P = point_coords.shape[1]

    Qp = _round_up(Q, 16)                       # sublane-dense (bf16) queries
    Tp = _round_up(max(T, 1), 128)              # lane-dense output columns
    TP = min(_round_up(P, 128), _round_up(point_chunk, 128))  # point tile
    Pp = _round_up(P, TP)                       # padded point axis
    n_k = Pp // TP

    idx, wts = build_point_corners(point_coords.astype(jnp.float32), H, W)

    out_flat = pred_masks.reshape(B, Q, H * W)
    tgt_flat = tgt_masks.reshape(B, T, H * W)

    # Data-dependent gather + bilinear combine fused by XLA in the wrapper;
    # only the combined point matrices go to the kernel, in bf16.
    out_pts = _sample_points(out_flat, idx, wts)            # (B, Q, P)
    tgt_pts = _sample_points(tgt_flat, idx, wts)            # (B, T, P)

    out_pts_p = jnp.pad(out_pts, ((0, 0), (0, Qp - Q), (0, Pp - P))
                        ).astype(jnp.bfloat16)              # (B, Qp, Pp)
    tgt_pts_T = jnp.pad(jnp.swapaxes(tgt_pts, 1, 2),
                        ((0, 0), (0, Pp - P), (0, Tp - T))
                        ).astype(jnp.bfloat16)              # (B, Pp, Tp)

    logits_p = jnp.pad(pred_logits.astype(jnp.float32),
                       ((0, 0), (0, Qp - Q), (0, 0)))        # (B, Qp, C)
    labels_p = jnp.pad(tgt_labels.astype(jnp.int32),
                       ((0, 0), (0, Tp - T)),
                       constant_values=-1)[:, None, :]       # (B, 1, Tp)

    kernel = functools.partial(_matcher_cost_kernel,
                               w_class=float(cost_class),
                               w_mask=float(cost_mask),
                               w_dice=float(cost_dice),
                               num_points=int(P),
                               num_pad=int(Pp - P))

    cost = pl.pallas_call(
        kernel,
        out_shape=jax.ShapeDtypeStruct((B, Qp, Tp), jnp.float32),
        grid_spec=pltpu.PrefetchScalarGridSpec(
            num_scalar_prefetch=0,
            grid=(B, n_k),
            in_specs=[
                pl.BlockSpec((1, Qp, C), lambda b, k: (b, 0, 0)),
                pl.BlockSpec((1, 1, Tp), lambda b, k: (b, 0, 0)),
                pl.BlockSpec((1, Qp, TP), lambda b, k: (b, 0, k)),
                pl.BlockSpec((1, TP, Tp), lambda b, k: (b, k, 0)),
            ],
            out_specs=pl.BlockSpec((1, Qp, Tp), lambda b, k: (b, 0, 0)),
            scratch_shapes=[
                pltpu.VMEM((2 * Qp, Tp), jnp.float32),   # [x@t ; sig@t] acc
                pltpu.VMEM((Qp, 1), jnp.float32),        # rowsum softplus(x)
                pltpu.VMEM((Qp, 1), jnp.float32),        # rowsum sigmoid(x)
                pltpu.VMEM((1, Tp), jnp.float32),        # point-sum of targets
            ]),
        compiler_params=pltpu.CompilerParams(
            dimension_semantics=("parallel", "arbitrary"),
            vmem_limit_bytes=32 * 1024 * 1024),
    )(logits_p, labels_p, out_pts_p, tgt_pts_T)

    # Drop padded queries / targets before the host-side assignment (padded
    # rows/columns carry garbage cost and must not be visible to the matcher).
    return cost[:, :Q, :T]


# ---------------------------------------------------------------------------
# Host-side reference (float64 numpy) and assignment
# ---------------------------------------------------------------------------
def reference_cost_np(pred_logits, pred_masks, tgt_labels, tgt_masks, idx, wts,
                      cost_class=1.0, cost_mask=1.0, cost_dice=1.0):
    pred_logits = np.asarray(pred_logits, np.float64)
    pred_masks = np.asarray(pred_masks, np.float64)
    tgt_labels = np.asarray(tgt_labels)
    tgt_masks = np.asarray(tgt_masks, np.float64)
    idx = np.asarray(idx)
    wts = np.asarray(wts, np.float64)
    B, Q, _ = pred_logits.shape
    T = tgt_labels.shape[1]
    out = []
    for b in range(B):
        z = pred_logits[b] - pred_logits[b].max(-1, keepdims=True)
        e = np.exp(z)
        prob = e / e.sum(-1, keepdims=True)
        cc = -prob[:, tgt_labels[b]]
        om_flat = pred_masks[b].reshape(Q, -1)
        tm_flat = tgt_masks[b].reshape(T, -1)
        om = (om_flat[:, idx[b]] * wts[b][None, :, :]).sum(axis=1)   # (Q, P)
        tm = (tm_flat[:, idx[b]] * wts[b][None, :, :]).sum(axis=1)   # (T, P)
        x = om
        sp = np.log(1.0 + np.exp(-np.abs(x)))
        pos = np.maximum(x, 0.0) - x + sp
        neg = np.maximum(x, 0.0) + sp
        cm = (pos @ tm.T + neg @ (1.0 - tm).T) / x.shape[1]
        s = 1.0 / (1.0 + np.exp(-x))
        cd = 1.0 - (2.0 * (s @ tm.T) + 1.0) / (s.sum(-1)[:, None] + tm.sum(-1)[None, :] + 1.0)
        out.append(cost_mask * cm + cost_class * cc + cost_dice * cd)
    return np.stack(out)


def greedy_assignment(C):
    C = np.array(C, np.float64, copy=True)
    n = min(C.shape)
    rows, cols = [], []
    for _ in range(n):
        r, c = np.unravel_index(np.argmin(C), C.shape)
        rows.append(r)
        cols.append(c)
        C[r, :] = np.inf
        C[:, c] = np.inf
    order = np.argsort(rows)
    return np.asarray(rows)[order], np.asarray(cols)[order]


if __name__ == "__main__":
    B, Q, C = 2, 8, 16      # batch, num_queries, num_classes
    H = W = 16              # mask resolution
    T = 8                   # targets per image (fixed for synthetic data)
    P = 192                 # num_points sampled by the matcher

    key = jax.random.PRNGKey(0)
    k1, k2, k3, k4, k5 = jax.random.split(key, 5)
    pred_logits = jax.random.normal(k1, (B, Q, C), dtype=jnp.float32)
    pred_masks = jax.random.normal(k2, (B, Q, H, W), dtype=jnp.float32)
    tgt_labels = jax.random.randint(k3, (B, T), 0, C)
    tgt_masks = (jax.random.uniform(k4, (B, T, H, W)) > 0.5).astype(jnp.float32)
    point_coords = jax.random.uniform(k5, (B, P, 2), dtype=jnp.float32)

    # point_chunk=128 at these toy sizes exercises the multi-chunk accumulator
    # path (n_k > 1) and the padded-column correction.
    cost = matcher_cost(pred_logits, pred_masks, tgt_labels, tgt_masks,
                        point_coords, cost_class=1.0, cost_mask=1.0,
                        cost_dice=1.0, point_chunk=128)
    cost = jax.block_until_ready(cost)

    # correctness check of the Pallas hot path against a float64 host reference
    # (tolerance reflects bf16 DMA/MXU operands with f32 accumulation)
    idx, wts = build_point_corners(point_coords, H, W)
    ref = reference_cost_np(pred_logits, pred_masks, tgt_labels, tgt_masks,
                            np.asarray(idx), np.asarray(wts))
    np.testing.assert_allclose(np.asarray(cost), ref, rtol=2e-2, atol=2e-2)

    # final 1-to-1 matching on host (Hungarian if scipy available, else greedy)
    indices = []
    for b in range(B):
        Cb = np.asarray(cost[b])
        if linear_sum_assignment is not None:
            i, j = linear_sum_assignment(Cb)
        else:
            i, j = greedy_assignment(Cb)
        indices.append((np.asarray(i, np.int64), np.asarray(j, np.int64)))

    print("KERNEL_OK")
</pallas_src>

<mosaic_0001>
module attributes {stable_mosaic.version = 11 : i64} {
  func.func @_matcher_cost_kernel(%arg0: i32, %arg1: i32, %arg2: memref<1x16x16xf32, #tpu.memory_space<vmem>>, %arg3: memref<1x1x128xi32, #tpu.memory_space<vmem>>, %arg4: memref<1x16x128xbf16, #tpu.memory_space<vmem>>, %arg5: memref<1x128x128xbf16, #tpu.memory_space<vmem>>, %arg6: memref<1x16x128xf32, #tpu.memory_space<vmem>>, %arg7: memref<32x128xf32, #tpu.memory_space<vmem>>, %arg8: memref<16x1xf32, #tpu.memory_space<vmem>>, %arg9: memref<16x1xf32, #tpu.memory_space<vmem>>, %arg10: memref<1x128xf32, #tpu.memory_space<vmem>>) attributes {dimension_semantics = [#tpu.dimension_semantics<parallel>, #tpu.dimension_semantics<arbitrary>], iteration_bounds = array<i64: 2, 2>, scalar_prefetch = 0 : i64, scratch_operands = 4 : i64, tpu.core_type = #tpu.core_type<tc>, window_params = [{transform_indices = @transform_0, window_bounds = array<i64: 1, 16, 16>}, {transform_indices = @transform_1, window_bounds = array<i64: 1, 1, 128>}, {transform_indices = @transform_2, window_bounds = array<i64: 1, 16, 128>}, {transform_indices = @transform_3, window_bounds = array<i64: 1, 128, 128>}, {transform_indices = @transform_4, window_bounds = array<i64: 1, 16, 128>}]} {
    %c0_i32 = arith.constant 0 : i32
    %0 = arith.cmpi eq, %arg1, %c0_i32 : i32
    %1 = arith.extui %0 : i1 to i32
    %c0_i32_0 = arith.constant 0 : i32
    %2 = arith.cmpi ne, %1, %c0_i32_0 : i32
    scf.if %2 {
      %cst_32 = arith.constant 0.000000e+00 : f32
      %51 = vector.broadcast %cst_32 : f32 to vector<32x128xf32>
      %c0_33 = arith.constant 0 : index
      %c0_34 = arith.constant 0 : index
      %52 = vector.load %arg7[%c0_33, %c0_34] : memref<32x128xf32, #tpu.memory_space<vmem>>, vector<32x128xf32>
      tpu.vector_store %arg7[%c0_33, %c0_34], %51 {strides = array<i32>} : memref<32x128xf32, #tpu.memory_space<vmem>>, vector<32x128xf32>,
      %cst_35 = arith.constant 0.000000e+00 : f32
      %53 = vector.broadcast %cst_35 : f32 to vector<16x1xf32>
      %c0_36 = arith.constant 0 : index
      %c0_37 = arith.constant 0 : index
      %54 = vector.load %arg8[%c0_36, %c0_37] : memref<16x1xf32, #tpu.memory_space<vmem>>, vector<16x1xf32>
      tpu.vector_store %arg8[%c0_36, %c0_37], %53 {strides = array<i32>} : memref<16x1xf32, #tpu.memory_space<vmem>>, vector<16x1xf32>,
      %cst_38 = arith.constant 0.000000e+00 : f32
      %55 = vector.broadcast %cst_38 : f32 to vector<16x1xf32>
      %c0_39 = arith.constant 0 : index
      %c0_40 = arith.constant 0 : index
      %56 = vector.load %arg9[%c0_39, %c0_40] : memref<16x1xf32, #tpu.memory_space<vmem>>, vector<16x1xf32>
      tpu.vector_store %arg9[%c0_39, %c0_40], %55 {strides = array<i32>} : memref<16x1xf32, #tpu.memory_space<vmem>>, vector<16x1xf32>,
      %cst_41 = arith.constant 0.000000e+00 : f32
      %57 = vector.broadcast %cst_41 : f32 to vector<1x128xf32>
      %c0_42 = arith.constant 0 : index
      %c0_43 = arith.constant 0 : index
      %58 = vector.load %arg10[%c0_42, %c0_43] : memref<1x128xf32, #tpu.memory_space<vmem>>, vector<1x128xf32>
      tpu.vector_store %arg10[%c0_42, %c0_43], %57 {strides = array<i32>} : memref<1x128xf32, #tpu.memory_space<vmem>>, vector<1x128xf32>,
    } else {
    }
    %c0 = arith.constant 0 : index
    %c0_1 = arith.constant 0 : index
    %c0_2 = arith.constant 0 : index
    %3 = vector.load %arg4[%c0, %c0_1, %c0_2] : memref<1x16x128xbf16, #tpu.memory_space<vmem>>, vector<1x16x128xbf16>
    %4 = vector.shape_cast %3 : vector<1x16x128xbf16> to vector<16x128xbf16>
    %c0_3 = arith.constant 0 : index
    %c0_4 = arith.constant 0 : index
    %c0_5 = arith.constant 0 : index
    %5 = vector.load %arg5[%c0_3, %c0_4, %c0_5] : memref<1x128x128xbf16, #tpu.memory_space<vmem>>, vector<1x128x128xbf16>
    %6 = vector.shape_cast %5 : vector<1x128x128xbf16> to vector<128x128xbf16>
    %7 = arith.extf %4 : vector<16x128xbf16> to vector<16x128xf32>
    %8 = math.absf %7 : vector<16x128xf32>
    %cst = arith.constant 0.000000e+00 : f32
    %9 = vector.broadcast %cst : f32 to vector<16x128xf32>
    %10 = arith.subf %9, %8 : vector<16x128xf32>
    %11 = math.exp %10 : vector<16x128xf32>
    %cst_6 = arith.constant 0.000000e+00 : f32
    %12 = vector.broadcast %cst_6 : f32 to vector<16x128xf32>
    %13 = arith.maximumf %7, %12 : vector<16x128xf32>
    %cst_7 = arith.constant 1.000000e+00 : f32
    %14 = vector.broadcast %cst_7 : f32 to vector<16x128xf32>
    %15 = arith.addf %14, %11 : vector<16x128xf32>
    %16 = math.log %15 : vector<16x128xf32>
    %17 = arith.addf %13, %16 : vector<16x128xf32>
    %cst_8 = arith.constant 1.000000e+00 : f32
    %18 = vector.broadcast %cst_8 : f32 to vector<16x128xf32>
    %19 = arith.addf %18, %11 : vector<16x128xf32>
    %20 = tpu.reciprocal %19 {approx = true} : vector<16x128xf32> -> vector<16x128xf32>
    %cst_9 = arith.constant 0.000000e+00 : f32
    %21 = vector.broadcast %cst_9 : f32 to vector<16x128xf32>
    %22 = arith.cmpf oge, %7, %21 : vector<16x128xf32>
    %cst_10 = arith.constant 1.000000e+00 : f32
    %23 = vector.broadcast %cst_10 : f32 to vector<16x128xf32>
    %24 = arith.subf %23, %20 : vector<16x128xf32>
    %25 = arith.select %22, %20, %24 : vector<16x128xi1>, vector<16x128xf32>
    %26 = arith.truncf %25 : vector<16x128xf32> to vector<16x128xbf16>
    %27 = tpu.concatenate %4, %26 in 0 : vector<16x128xbf16>, vector<16x128xbf16> -> vector<32x128xbf16>
    %c0_11 = arith.constant 0 : index
    %c0_12 = arith.constant 0 : index
    %28 = vector.load %arg7[%c0_11, %c0_12] : memref<32x128xf32, #tpu.memory_space<vmem>>, vector<32x128xf32>
    %cst_13 = arith.constant dense<0.000000e+00> : vector<32x128xf32>
    %29 = tpu.matmul %27, %6, %cst_13 {dimension_numbers = #tpu.dot_dimension_numbers<[1], [0], [0], [1], [0, 0, 1, 1], [], []>} : vector<32x128xbf16>, vector<128x128xbf16>, vector<32x128xf32> -> vector<32x128xf32>
    %30 = arith.addf %28, %29 : vector<32x128xf32>
    %c0_14 = arith.constant 0 : index
    %c0_15 = arith.constant 0 : index
    %31 = vector.load %arg7[%c0_14, %c0_15] : memref<32x128xf32, #tpu.memory_space<vmem>>, vector<32x128xf32>
    tpu.vector_store %arg7[%c0_14, %c0_15], %30 {strides = array<i32>} : memref<32x128xf32, #tpu.memory_space<vmem>>, vector<32x128xf32>,
    %c0_16 = arith.constant 0 : index
    %c0_17 = arith.constant 0 : index
    %32 = vector.load %arg8[%c0_16, %c0_17] : memref<16x1xf32, #tpu.memory_space<vmem>>, vector<16x1xf32>
    %cst_18 = arith.constant dense<0.000000e+00> : vector<16xf32>
    %33 = vector.multi_reduction <add>, %17, %cst_18 [1] : vector<16x128xf32> to vector<16xf32>
    %34 = vector.shape_cast %33 : vector<16xf32> to vector<16x1xf32>
    %35 = arith.addf %32, %34 : vector<16x1xf32>
    %c0_19 = arith.constant 0 : index
    %c0_20 = arith.constant 0 : index
    %36 = vector.load %arg8[%c0_19, %c0_20] : memref<16x1xf32, #tpu.memory_space<vmem>>, vector<16x1xf32>
    tpu.vector_store %arg8[%c0_19, %c0_20], %35 {strides = array<i32>} : memref<16x1xf32, #tpu.memory_space<vmem>>, vector<16x1xf32>,
    %c0_21 = arith.constant 0 : index
    %c0_22 = arith.constant 0 : index
    %37 = vector.load %arg9[%c0_21, %c0_22] : memref<16x1xf32, #tpu.memory_space<vmem>>, vector<16x1xf32>
    %cst_23 = arith.constant dense<0.000000e+00> : vector<16xf32>
    %38 = vector.multi_reduction <add>, %25, %cst_23 [1] : vector<16x128xf32> to vector<16xf32>
    %39 = vector.shape_cast %38 : vector<16xf32> to vector<16x1xf32>
    %40 = arith.addf %37, %39 : vector<16x1xf32>
    %c0_24 = arith.constant 0 : index
    %c0_25 = arith.constant 0 : index
    %41 = vector.load %arg9[%c0_24, %c0_25] : memref<16x1xf32, #tpu.memory_space<vmem>>, vector<16x1xf32>
    tpu.vector_store %arg9[%c0_24, %c0_25], %40 {strides = array<i32>} : memref<16x1xf32, #tpu.memory_space<vmem>>, vector<16x1xf32>,
    %c0_26 = arith.constant 0 : index
    %c0_27 = arith.constant 0 : index
    %42 = vector.load %arg10[%c0_26, %c0_27] : memref<1x128xf32, #tpu.memory_space<vmem>>, vector<1x128xf32>
    %43 = arith.extf %6 : vector<128x128xbf16> to vector<128x128xf32>
    %cst_28 = arith.constant dense<0.000000e+00> : vector<128xf32>
    %44 = vector.multi_reduction <add>, %43, %cst_28 [0] : vector<128x128xf32> to vector<128xf32>
    %45 = vector.shape_cast %44 : vector<128xf32> to vector<1x128xf32>
    %46 = arith.addf %42, %45 : vector<1x128xf32>
    %c0_29 = arith.constant 0 : index
    %c0_30 = arith.constant 0 : index
    %47 = vector.load %arg10[%c0_29, %c0_30] : memref<1x128xf32, #tpu.memory_space<vmem>>, vector<1x128xf32>
    tpu.vector_store %arg10[%c0_29, %c0_30], %46 {strides = array<i32>} : memref<1x128xf32, #tpu.memory_space<vmem>>, vector<1x128xf32>,
    %c1_i32 = arith.constant 1 : i32
    %48 = arith.cmpi eq, %arg1, %c1_i32 : i32
    %49 = arith.extui %48 : i1 to i32
    %c0_i32_31 = arith.constant 0 : i32
    %50 = arith.cmpi ne, %49, %c0_i32_31 : i32
    scf.if %50 {
      %c0_32 = arith.constant 0 : index
      %c0_33 = arith.constant 0 : index
      %c0_34 = arith.constant 0 : index
      %51 = vector.load %arg2[%c0_32, %c0_33, %c0_34] : memref<1x16x16xf32, #tpu.memory_space<vmem>>, vector<1x16x16xf32>
      %52 = vector.shape_cast %51 : vector<1x16x16xf32> to vector<16x16xf32>
      %c0_35 = arith.constant 0 : index
      %c0_36 = arith.constant 0 : index
      %c0_37 = arith.constant 0 : index
      %53 = vector.load %arg3[%c0_35, %c0_36, %c0_37] : memref<1x1x128xi32, #tpu.memory_space<vmem>>, vector<1x1x128xi32>
      %54 = vector.shape_cast %53 : vector<1x1x128xi32> to vector<1x128xi32>
      %cst_38 = arith.constant dense<0xFF800000> : vector<16xf32>
      %55 = vector.multi_reduction <maximumf>, %52, %cst_38 [1] : vector<16x16xf32> to vector<16xf32>
      %56 = vector.shape_cast %55 : vector<16xf32> to vector<16x1xf32>
      %57 = vector.broadcast %56 : vector<16x1xf32> to vector<16x16xf32>
      %58 = arith.subf %52, %57 : vector<16x16xf32>
      %59 = math.exp %58 : vector<16x16xf32>
      %cst_39 = arith.constant dense<0.000000e+00> : vector<16xf32>
      %60 = vector.multi_reduction <add>, %59, %cst_39 [1] : vector<16x16xf32> to vector<16xf32>
      %61 = vector.shape_cast %60 : vector<16xf32> to vector<16x1xf32>
      %cst_40 = arith.constant 1.000000e+00 : f32
      %62 = vector.broadcast %cst_40 : f32 to vector<16x1xf32>
      %63 = arith.divf %62, %61 : vector<16x1xf32>
      %64 = tpu.iota {dimensions = array<i32: 0>} : vector<16x128xi32>
      %65 = vector.broadcast %54 : vector<1x128xi32> to vector<16x128xi32>
      %66 = arith.cmpi eq, %64, %65 : vector<16x128xi32>
      %67 = arith.extui %66 : vector<16x128xi1> to vector<16x128xi32>
      %68 = arith.sitofp %67 : vector<16x128xi32> to vector<16x128xf32>
      %cst_41 = arith.constant dense<0.000000e+00> : vector<16x128xf32>
      %69 = tpu.matmul %59, %68, %cst_41 {dimension_numbers = #tpu.dot_dimension_numbers<[1], [0], [0], [1], [0, 0, 1, 1], [], []>} : vector<16x16xf32>, vector<16x128xf32>, vector<16x128xf32> -> vector<16x128xf32>
      %cst_42 = arith.constant 0.000000e+00 : f32
      %70 = vector.broadcast %cst_42 : f32 to vector<16x128xf32>
      %71 = arith.subf %70, %69 : vector<16x128xf32>
      %72 = vector.broadcast %63 : vector<16x1xf32> to vector<16x128xf32>
      %73 = arith.mulf %71, %72 : vector<16x128xf32>
      %c0_43 = arith.constant 0 : index
      %c0_44 = arith.constant 0 : index
      %74 = vector.load %arg8[%c0_43, %c0_44] : memref<16x1xf32, #tpu.memory_space<vmem>>, vector<16x1xf32>
      %cst_45 = arith.constant 44.3614197 : f32
      %75 = vector.broadcast %cst_45 : f32 to vector<16x1xf32>
      %76 = arith.subf %74, %75 : vector<16x1xf32>
      %c0_46 = arith.constant 0 : index
      %c0_47 = arith.constant 0 : index
      %77 = vector.load %arg9[%c0_46, %c0_47] : memref<16x1xf32, #tpu.memory_space<vmem>>, vector<16x1xf32>
      %cst_48 = arith.constant 3.200000e+01 : f32
      %78 = vector.broadcast %cst_48 : f32 to vector<16x1xf32>
      %79 = arith.subf %77, %78 : vector<16x1xf32>
      %c0_49 = arith.constant 0 : index
      %c0_50 = arith.constant 0 : index
      %80 = vector.load %arg7[%c0_49, %c0_50] : memref<32x128xf32, #tpu.memory_space<vmem>>, vector<32x128xf32>
      %81 = vector.extract_strided_slice %80 {offsets = [0, 0], sizes = [16, 128], strides = [1, 1]} : vector<32x128xf32> to vector<16x128xf32>
      %82 = vector.extract_strided_slice %80 {offsets = [16, 0], sizes = [16, 128], strides = [1, 1]} : vector<32x128xf32> to vector<16x128xf32>
      %83 = vector.broadcast %76 : vector<16x1xf32> to vector<16x128xf32>
      %84 = arith.subf %83, %81 : vector<16x128xf32>
      %cst_51 = arith.constant 0.00520833349 : f32
      %85 = vector.broadcast %cst_51 : f32 to vector<16x128xf32>
      %86 = arith.mulf %84, %85 : vector<16x128xf32>
      %c0_52 = arith.constant 0 : index
      %c0_53 = arith.constant 0 : index
      %87 = vector.load %arg10[%c0_52, %c0_53] : memref<1x128xf32, #tpu.memory_space<vmem>>, vector<1x128xf32>
      %88 = vector.broadcast %79 : vector<16x1xf32> to vector<16x128xf32>
      %89 = vector.broadcast %87 : vector<1x128xf32> to vector<16x128xf32>
      %90 = arith.addf %88, %89 : vector<16x128xf32>
      %cst_54 = arith.constant 1.000000e+00 : f32
      %91 = vector.broadcast %cst_54 : f32 to vector<16x128xf32>
      %92 = arith.addf %90, %91 : vector<16x128xf32>
      %cst_55 = arith.constant 2.000000e+00 : f32
      %93 = vector.broadcast %cst_55 : f32 to vector<16x128xf32>
      %94 = arith.mulf %93, %82 : vector<16x128xf32>
      %cst_56 = arith.constant 1.000000e+00 : f32
      %95 = vector.broadcast %cst_56 : f32 to vector<16x128xf32>
      %96 = arith.addf %94, %95 : vector<16x128xf32>
      %97 = tpu.reciprocal %92 {approx = true} : vector<16x128xf32> -> vector<16x128xf32>
      %98 = arith.mulf %96, %97 : vector<16x128xf32>
      %cst_57 = arith.constant 1.000000e+00 : f32
      %99 = vector.broadcast %cst_57 : f32 to vector<16x128xf32>
      %100 = arith.subf %99, %98 : vector<16x128xf32>
      %cst_58 = arith.constant 1.000000e+00 : f32
      %101 = vector.broadcast %cst_58 : f32 to vector<16x128xf32>
      %102 = arith.mulf %101, %86 : vector<16x128xf32>
      %cst_59 = arith.constant 1.000000e+00 : f32
      %103 = vector.broadcast %cst_59 : f32 to vector<16x128xf32>
      %104 = arith.mulf %103, %73 : vector<16x128xf32>
      %105 = arith.addf %102, %104 : vector<16x128xf32>
      %cst_60 = arith.constant 1.000000e+00 : f32
      %106 = vector.broadcast %cst_60 : f32 to vector<16x128xf32>
      %107 = arith.mulf %106, %100 : vector<16x128xf32>
      %108 = arith.addf %105, %107 : vector<16x128xf32>
      %c0_61 = arith.constant 0 : index
      %c0_62 = arith.constant 0 : index
      %c0_63 = arith.constant 0 : index
      %109 = vector.load %arg6[%c0_61, %c0_62, %c0_63] : memref<1x16x128xf32, #tpu.memory_space<vmem>>, vector<1x16x128xf32>
      %110 = vector.shape_cast %109 : vector<1x16x128xf32> to vector<16x128xf32>
      %111 = vector.shape_cast %108 : vector<16x128xf32> to vector<1x16x128xf32>
      tpu.vector_store %arg6[%c0_61, %c0_62, %c0_63], %111 {strides = array<i32>} : memref<1x16x128xf32, #tpu.memory_space<vmem>>, vector<1x16x128xf32>,
    } else {
    }
    return
  }
  func.func @transform_0(%arg0: i32, %arg1: i32) -> (i32, i32, i32) {
    %c0_i32 = arith.constant 0 : i32
    %c0_i32_0 = arith.constant 0 : i32
    %c0_i32_1 = arith.constant 0 : i32
    return %arg0, %c0_i32, %c0_i32_0 : i32, i32, i32
  }
  func.func @transform_1(%arg0: i32, %arg1: i32) -> (i32, i32, i32) {
    %c0_i32 = arith.constant 0 : i32
    %c0_i32_0 = arith.constant 0 : i32
    %c0_i32_1 = arith.constant 0 : i32
    return %arg0, %c0_i32, %c0_i32_0 : i32, i32, i32
  }
  func.func @transform_2(%arg0: i32, %arg1: i32) -> (i32, i32, i32) {
    %c0_i32 = arith.constant 0 : i32
    %c0_i32_0 = arith.constant 0 : i32
    return %arg0, %c0_i32, %arg1 : i32, i32, i32
  }
  func.func @transform_3(%arg0: i32, %arg1: i32) -> (i32, i32, i32) {
    %c0_i32 = arith.constant 0 : i32
    %c0_i32_0 = arith.constant 0 : i32
    return %arg0, %arg1, %c0_i32 : i32, i32, i32
  }
  func.func @transform_4(%arg0: i32, %arg1: i32) -> (i32, i32, i32) {
    %c0_i32 = arith.constant 0 : i32
    %c0_i32_0 = arith.constant 0 : i32
    %c0_i32_1 = arith.constant 0 : i32
    return %arg0, %c0_i32, %c0_i32_0 : i32, i32, i32
  }
}

</mosaic_0001>

<bundles_post_ra>
// kernel: tpu_custom_call.1
= control target key start
LH: loop header
LB: loop body
LE: loop exit
PB: predicated region body
PF: predicated region fallthrough
CT: control target
= control target key end

     0   :  { %s1840_s0 = inlined_call_operand.hbm [shape: f32[2,16,16], index: 0, kind: input, shape index: {}]   ;;  %s1841_s1 = inlined_call_operand.vmem [shape: s32[2,1,128], index: 1, kind: input, shape index: {}]   ;;  %s1842_s2 = inlined_call_operand.hbm [shape: bf16[2,16,256], index: 2, kind: input, shape index: {}]   ;;  %s1843_s3 = inlined_call_operand.hbm [shape: bf16[2,256,128], index: 3, kind: input, shape index: {}]   ;;  %s1844_s4 = inlined_call_operand.hbm [shape: f32[2,16,128], index: 4, kind: output, shape index: {}]  }
   0x1   :  { %1862 = sst [smem:[#allocation25_spill]] %s1840_s0 }
   0x2   :  { %1863 = sst [smem:[#allocation26_spill]] %s1842_s2 }
   0x3   :  { %1864 = sst [smem:[#allocation27_spill]] %s1844_s4 }
   0x4   :  { %9 = vsyncpa [#allocation7], 0 }
   0x5   :  { %11 = vsyncpa [#allocation7 + $0x1], 0 }
   0x6   :  { %12 = vsyncpa [#allocation10], 0 }
   0x7   :  { %14 = vsyncpa [#allocation10 + $0x1], 0 }
   0x8   :  { %15 = vsyncpa [#allocation8], 0 }
   0x9   :  { %17 = vsyncpa [#allocation8 + $0x1], 0  ;;  %s1426_s15 = smov 0   ;;  %s1428_s16 = smov 0  }
   0xa   :  { %s1430_s17 = smov 0   ;;  %s1432_s18 = smov 0  }
   0xb   :  { %s1434_s19 = smov 0   ;;  %s1436_s20 = smov 0  }
   0xc   :  { %s1438_s21 = smov 0   ;;  %s1440_s22 = smov 0  }
   0xd   :  { %s1442_s23 = smov 0   ;;  %s1444_s24 = smov 0  }
   0xe   :  { %s1446_s25 = smov 0  }
   0xf LB: > { %1865 = sst [smem:[#allocation16_spill]] %s1354_s17  ;;  %s32_s26 = sadd.s32 1, %s1378_s23  ;;  %s1386_s25 = sphi %s1446_s25, %s23_s25   ;;  %s1382_s24 = sphi %s1444_s24, %s1917_s24   ;;  %s1378_s23 = sphi %s1442_s23, %s1916_s23   ;;  %s1374_s22 = sphi %s1440_s22, %s1915_s22   ;;  %s1370_s21 = sphi %s1438_s21, %s1914_s21   ;;  %s1366_s20 = sphi %s1436_s20, %s1907_s20   ;;  %s1362_s19 = sphi %s1434_s19, %s1913_s19   ;;  %s1358_s18 = sphi %s1432_s18, %s1912_s18   ;;  %s1354_s17 = sphi %s1430_s17, %s1905_s17   ;;  %s1350_s16 = sphi %s1428_s16, %s1911_s16   ;;  %s1346_s15 = sphi %s1426_s15, %s1910_s15  }
  0x10   : > { %1866 = sst [smem:[#allocation17_spill]] %s1358_s18  ;;  %s35_s27 = sadd.s32 1, %s1382_s24 }
  0x11   : > { %1867 = sst [smem:[#allocation18_spill]] %s1366_s20  ;;  %p33_p0 = scmp.ge.s32.totalorder %s32_s26, 2 }
  0x12   : > { %1868 = sst [smem:[#allocation19_spill]] %s1370_s21  ;;  %p1849_p1 = scmp.eq.s32.totalorder %s1386_s25, 0 }
  0x13   : > { %s96_s28 = sadd.s32 1, %s1354_s17  ;;  %p103_p2 = scmp.ne.s32.totalorder %s1354_s17, %s1350_s16 }
  0x14   : > { %s1919_s26 = smov (%p33_p0, %s32_s26), 0  ;;  %s1921_s27 = smov (!%p33_p0, %s35_s27), %s1382_s24 }
  0x15   : > { %1869 = sst [smem:[#allocation20_spill]] %s1919_s26  ;;  %s92_s29 = ssub.s32 %s1378_s23, %s1919_s26 }
  0x16   : > { %p1494_p3 = por %p103_p2, %p1849_p1  ;;  %p37_p4 = scmp.ge.s32.totalorder %s1921_s27, 2 }
  0x17   : > { %p1848_p6 = scmp.lt.s32.totalorder %s1386_s25, 4  ;;  %s214_s5 = sand.u32 1, %s1386_s25  }
  0x18   : > { %s1923_s27 = smov (%p37_p4, %s1921_s27), 0  ;;  %s1853_s8 = sand.u32 1, %s1354_s17  }
  0x19   : > { %1871 = sst [smem:[#allocation21_spill]] %s1923_s27  ;;  %s1506_s6 = ssub.s32 %s1382_s24, %s1923_s27 }
  0x1a   : > { %s93_s7 = sor.u32 %s92_s29, %s1506_s6  ;;  %s918_s9 = sshll.u32 %s1853_s8, 3 }
  0x1b   : > { %p94_p7 = scmp.eq.s32.totalorder %s93_s7, 0  ;;  %s919_s10 = sshll.u32 %s1382_s24, 2 }
  0x1c   : > { %s223_s12 = sadd.s32 %s1378_s23, %s919_s10  ;;  %s218_s13 = scalar_lea.vmem [#allocation9], %s918_s9 }
  0x1d   : > { %s1514_s11 = scalar_select %p94_p7, %s1354_s17, %s96_s28  }
  0x1e   : > { %s226_s14 = sshll.u32 %s218_s13, 4  ;;  %s920_s26 = sshll.u32 %s223_s12, 6  ;;  %s1517_s14 = int_to_ptr.vmem [resolvable:$true] %s226_s14 }
  0x1f   : > { %1872 = sst [smem:[#allocation22_spill]] %s1514_s11  ;;  %s1873_s2 = sld [smem:[#allocation26_spill]] }
  0x20   : > { %p1528_p8 = pnand %p1848_p6, %p1494_p3  ;;  %p925_p9 = scmp.ge.s32.totalorder %s1386_s25, 1 }
  0x21   : > { %s1533_s29 = scalar_lea.sflag [#allocation10], %s214_s5 }
  0x22   : > { %p1856_p11 = pneg %p1528_p8 }
  0x25   : > { %s1522_s27 = scalar_lea.hbm %s1873_s2, %s920_s26  ;;  %s1175_s26 = scalar_lea.hbm %s1873_s2, 512 }
  0x26   : > { %s1170_s7 = scalar_lea.hbm %s1522_s27, 128  ;;  %p1176_p0 = scmp.lt.u32.totalorder %s1522_s27, %s1873_s2 }
  0x27   : > { %p1171_p10 = scmp.ne.s32.totalorder %s1522_s27, %s1170_s7  ;;  %p1177_p2 = scmp.lt.u32.totalorder %s1175_s26, %s1170_s7 }
  0x28   : > { %p1179_p4 = scmp.lt.u32.totalorder %s1170_s7, %s1522_s27 }
  0x29   : > { %p1173_p12 = pnand %p1856_p11, %p1171_p10  ;;  %p1178_p3 = por %p1177_p2, %p1176_p0 }
  0x2b   : > { %p1174_p13 = pneg %p1173_p12  ;;  %p1180_p7 = por %p1179_p4, %p1178_p3 }
  0x2d   : > { %p1181_p6 = pnand %p1180_p7, %p1174_p13 }
  0x2f   : > { %1184 = shalt.err (!%p1181_p6)
}
  0x30   : > { %s1185_s5 = scalar_lea.vmem %s1517_s14, 128  ;;  %s1388_s10 = smov [#allocation9]  }
  0x31   : > { %p1186_p10 = scmp.ne.s32.totalorder %s1517_s14, %s1185_s5  ;;  %s1190_s12 = sshll.u32 %s1388_s10, 4  ;;  %s1191_s12 = int_to_ptr.vmem [resolvable:$false] %s1190_s12 }
  0x32   : > { %s1192_s13 = scalar_lea.vmem %s1191_s12, 256  ;;  %p1193_p1 = scmp.lt.s32.totalorder %s1517_s14, %s1191_s12 }
  0x33   : > { %p1188_p12 = pnand %p1186_p10, %p1856_p11  ;;  %p1194_p0 = scmp.lt.s32.totalorder %s1192_s13, %s1185_s5 }
  0x35   : > { %p1189_p5 = pneg %p1188_p12  ;;  %p1195_p2 = por %p1194_p0, %p1193_p1 }
  0x37   : > { %p1196_p3 = pnand %p1195_p2, %p1189_p5 }
  0x39   : > { %1199 = shalt.err (!%p1196_p3)
}
  0x3a   : > { %s1852_s7 = smov 128   ;;  %s1850_s4 = smov 64  }
  0x3b   : > { %s1851_s21 = smov 4   ;;  %p257_p1 = scmp.lt.s32.totalorder %s1386_s25, 5 }
  0x3c   : > { %1019 = dma.hbm_to_vmem [thread:$0]  (!%p1528_p8), %s1522_s27, 128, %s1517_s14, %s1533_s29, %s1852_s7, %s1850_s4, %s1851_s21  }
  0x3d   : > { %p1567_p5 = pnand %p925_p9, %p257_p1  ;;  %s1572_s30 = sadd.s32 4294967295, %s1386_s25  }
  0x3e   : > { %s912_s9 = sadd.s32 4294967294, %s1386_s25   ;;  %p40_p6 = scmp.eq.s32.totalorder %s1506_s6, 0 }
  0x3f   : > { %s1875_s26 = scalar_select %p1567_p5, 1, 0 }
  0x40   : > { %s42_s5 = sadd.s32 1, %s1366_s20  ;;  %p49_p13 = scmp.ne.s32.totalorder %s1366_s20, %s1362_s19 }
  0x41   : > { %p55_p4 = scmp.ne.s32.totalorder %s1362_s19, %s1358_s18  ;;  %p1877_p7 = scmp.eq.s32.totalorder %s1386_s25, 0 }
  0x42   : > { %s1582_s10 = scalar_select %p40_p6, %s1366_s20, %s42_s5  }
  0x43   : > { %p1586_p10 = por %p1877_p7, %p49_p13  ;;  %p56_p9 = scmp.eq.s32.totalorder %s1572_s30, 0 }
  0x44   : > { %1876 = sst [smem:[#allocation23_spill]] %s1582_s10  ;;  %p161_p12 = scmp.eq.s32.totalorder %s1572_s30, 3 }
  0x45   : > { %p167_p0 = scmp.eq.s32.totalorder %s912_s9, 3  ;;  %p1592_p2 = por %p56_p9, %p55_p4 }
  0x46   : > { %p1880_p3 = scmp.ne.s32.totalorder %s1350_s16, %s1346_s15  ;;  %p1603_p6 = por %p161_p12, %p49_p13 }
  0x47   : > { %s1879_s14 = scalar_select %p1592_p2, 1, 0 }
  0x48   : > { %p1599_p1 = por %p1880_p3, %p56_p9  ;;  %p1607_p7 = por %p167_p0, %p55_p4 }
  0x49   : > { %s1882_s12 = scalar_select %p1603_p6, 1, 0 }
  0x4a   : > { %s1881_s6 = scalar_select %p1599_p1, 1, 0 }
  0x4b   : > { %s1883_s13 = scalar_select %p1607_p7, 1, 0 }
  0x4c   : > { %s187_s5 = sand.u32 1, %s1366_s20   ;;  %s958_s4 = sshll.u32 %s1382_s24, 8 }
  0x4d   : > { %1884 = sst [smem:[#allocation24_spill]] %s1883_s13  ;;  %s915_s9 = sshll.u32 %s187_s5, 4 }
  0x4e   : > { %s1885_s0 = sld [smem:[#allocation25_spill]]  ;;  %s191_s15 = scalar_lea.vmem [#allocation6], %s915_s9 }
  0x4f   : > { %s198_s2 = sshll.u32 %s191_s15, 4  ;;  %p1886_p13 = scmp.lt.s32.totalorder %s1386_s25, 4  ;;  %s1626_s2 = int_to_ptr.vmem [resolvable:$true] %s198_s2 }
  0x50   : > { %s1888_s20 = sand.u32 1, %s1354_s17  }
  0x51   : > { %p1622_p4 = pnand %p1886_p13, %p1586_p10  ;;  %s1630_s7 = sshll.u32 %s1888_s20, 6 }
  0x53   : > { %p1202_p12 = pneg %p1622_p4 }
  0x54   : > { %s1616_s8 = scalar_lea.hbm %s1885_s0, %s958_s4  ;;  %s1632_s4 = scalar_lea.sflag [#allocation7], %s187_s5 }
  0x55   : > { %s1200_s21 = scalar_lea.hbm %s1616_s8, 256  ;;  %s1205_s15 = scalar_lea.hbm %s1885_s0, 512 }
  0x56   : > { %p1201_p9 = scmp.ne.s32.totalorder %s1616_s8, %s1200_s21  ;;  %p1206_p3 = scmp.lt.u32.totalorder %s1616_s8, %s1885_s0 }
  0x57   : > { %p1207_p13 = scmp.lt.u32.totalorder %s1205_s15, %s1200_s21  ;;  %p1209_p7 = scmp.lt.u32.totalorder %s1200_s21, %s1616_s8 }
  0x58   : > { %p1203_p0 = pnand %p1202_p12, %p1201_p9 }
  0x59   : > { %p1208_p11 = por %p1207_p13, %p1206_p3 }
  0x5a   : > { %p1204_p10 = pneg %p1203_p0 }
  0x5b   : > { %p1210_p6 = por %p1209_p7, %p1208_p11 }
  0x5d   : > { %p1211_p1 = pnand %p1210_p6, %p1204_p10 }
  0x5f   : > { %1214 = shalt.err (!%p1211_p1)
}
  0x60   : > { %s1215_s20 = scalar_lea.vmem %s1626_s2, 256  ;;  %s1392_s5 = smov [#allocation6]  }
  0x61   : > { %p1216_p9 = scmp.ne.s32.totalorder %s1626_s2, %s1215_s20  ;;  %s1220_s27 = sshll.u32 %s1392_s5, 4  ;;  %s1221_s27 = int_to_ptr.vmem [resolvable:$false] %s1220_s27 }
  0x62   : > { %s1222_s11 = scalar_lea.vmem %s1221_s27, 512  ;;  %p1223_p5 = scmp.lt.s32.totalorder %s1626_s2, %s1221_s27 }
  0x63   : > { %p1218_p0 = pnand %p1216_p9, %p1202_p12  ;;  %p1224_p3 = scmp.lt.s32.totalorder %s1222_s11, %s1215_s20 }
  0x65   : > { %p1219_p2 = pneg %p1218_p0  ;;  %p1225_p13 = por %p1224_p3, %p1223_p5 }
  0x67   : > { %p1226_p11 = pnand %p1225_p13, %p1219_p2 }
  0x69   : > { %1229 = shalt.err (!%p1226_p11)
}
  0x6a   : > { %s1393_s13 = smov 8   ;;  %s1889_s21 = smov 128  }
  0x6b   : > { %1016 = dma.hbm_to_vmem [thread:$0]  (!%p1622_p4), %s1616_s8, 256, %s1626_s2, %s1632_s4, %s1889_s21, %s1889_s21, %s1393_s13  }
  0x6c   : > { %s922_s9 = sshll.u32 %s1378_s23, 4  ;;  %s923_s15 = sshll.u32 %s1382_s24, 5 }
  0x6d   : > { %s240_s5 = scalar_lea.vmem [#allocation11], %s1630_s7  ;;  %s246_s27 = sadd.s32 %s923_s15, %s922_s9 }
  0x6e   : > { %s249_s20 = sshll.u32 %s240_s5, 4  ;;  %s924_s11 = sshll.u32 %s246_s27, 6  ;;  %s1665_s20 = int_to_ptr.vmem [resolvable:$true] %s249_s20 }
  0x6f   : > { %s1670_s17 = scalar_lea.hbm %s1843_s3, %s924_s11  ;;  %p1890_p2 = pneg %p1528_p8 }
  0x70   : > { %s1230_s18 = scalar_lea.hbm %s1670_s17, 1024  ;;  %s1235_s7 = scalar_lea.hbm %s1843_s3, 4096 }
  0x71   : > { %p1231_p5 = scmp.ne.s32.totalorder %s1670_s17, %s1230_s18  ;;  %p1236_p7 = scmp.lt.u32.totalorder %s1670_s17, %s1843_s3 }
  0x72   : > { %p1237_p4 = scmp.lt.u32.totalorder %s1235_s7, %s1230_s18  ;;  %p1239_p10 = scmp.lt.u32.totalorder %s1230_s18, %s1670_s17 }
  0x73   : > { %p1233_p1 = pnand %p1231_p5, %p1890_p2 }
  0x74   : > { %p1238_p12 = por %p1237_p4, %p1236_p7 }
  0x75   : > { %p1234_p6 = pneg %p1233_p1 }
  0x76   : > { %p1240_p9 = por %p1239_p10, %p1238_p12 }
  0x78   : > { %p1241_p0 = pnand %p1240_p9, %p1234_p6 }
  0x7a   : > { %1244 = shalt.err (!%p1241_p0)
}
  0x7b   : > { %s1245_s0 = scalar_lea.vmem %s1665_s20, 1024  ;;  %p1891_p13 = pmov %p1890_p2 }
  0x7c   : > { %p1246_p3 = scmp.ne.s32.totalorder %s1665_s20, %s1245_s0  ;;  %s1394_s21 = smov [#allocation11]  }
  0x7d   : > { %s1250_s9 = sshll.u32 %s1394_s21, 4  ;;  %s1251_s9 = int_to_ptr.vmem [resolvable:$false] %s1250_s9 }
  0x7e   : > { %p1248_p11 = pnand %p1246_p3, %p1891_p13  ;;  %s1252_s15 = scalar_lea.vmem %s1251_s9, 2048 }
  0x7f   : > { %p1253_p2 = scmp.lt.s32.totalorder %s1665_s20, %s1251_s9  ;;  %p1254_p1 = scmp.lt.s32.totalorder %s1252_s15, %s1245_s0 }
  0x80   : > { %p1249_p5 = pneg %p1248_p11 }
  0x81   : > { %p1255_p7 = por %p1254_p1, %p1253_p2 }
  0x83   : > { %p1256_p4 = pnand %p1255_p7, %p1249_p5 }
  0x85   : > { %1259 = shalt.err (!%p1256_p4)
}
  0x86   : > { %s1892_s18 = smov 4   ;;  %s1893_s5 = smov 64  }
  0x87   : > { %1022 = dma.hbm_to_vmem [thread:$0]  (!%p1528_p8), %s1670_s17, 1024, %s1665_s20, %s1533_s29, %s1893_s5, %s1893_s5, %s1892_s18  }
  0x88   : > { %p1894_p6 = scmp.ne.s32.totalorder %s1875_s26, 0 }
  0x89   : > { %s1702_s27 = sand.u32 (!%p1894_p6), 1, %s1362_s19   ;;  %p1895_p12 = scmp.ne.s32.totalorder (!%p1894_p6), %s1879_s14, 0 }
  0x8a   : > { %261 = sbr.rel (%p1894_p6) target bundleno = 670 (0x29e), region = 36  ;;  %s926_s11 = sshll.u32 (!%p1894_p6), %s1702_s27, 4 }
  0x8b   : > { %s264_s10 = scalar_lea.sflag (!%p1894_p6), [#allocation7], %s1702_s27  ;;  %s1706_s2 = scalar_lea.vmem (!%p1894_p6), [#allocation6], %s926_s11 }
  0x91   : > { %1333 = dma.done.wait (%p1895_p12), %s264_s10, 256  }
  0x92   : > { %1335 = vsyncadd (%p1895_p12), %s264_s10, 4294967040  ;;  %s272_s17 = sand.u32 1, %s1572_s30   ;;  %s274_s28 = sand.u32 1, %s1350_s16  }
  0x93   : > { %s1714_s29 = sshll.u32 %s274_s28, 3  ;;  %s273_s26 = scalar_lea.sflag [#allocation10], %s272_s17 }
  0x94   : > { %s276_s20 = scalar_lea.vmem [#allocation9], %s1714_s29  ;;  %p1896_p8 = scmp.ne.s32.totalorder %s1881_s6, 0 }
  0x96   : > { %1337 = dma.done.wait (%p1896_p8), %s273_s26, 1152  }
  0x97   : > { %1339 = vsyncadd (%p1896_p8), %s273_s26, 4294966144  ;;  %s928_s8 = sshll.u32 %s274_s28, 6  ;;  %p323_p10 = scmp.lt.s32.totalorder %s1374_s22, 1 }
  0x98   : > { %s1729_s13 = scalar_lea.vmem [#allocation11], %s928_s8  ;;  %s1731_s0 = scalar_lea.vmem [#allocation12], %s926_s11 }
  0x99   : > { %s1723_s14 = scalar_select %p323_p10, %s1374_s22, 1 }
  0x9a   : > { %s1897_s21 = sld [smem:[#allocation19_spill]] }
  0x9b   : > { %s325_s4 = scalar_lea.vmem %s1841_s1, %s1723_s14 }
  0xa0   : > { %p930_p9 = scmp.ne.s32.totalorder %s1897_s21, 0 }
  0xa1   : > { %vm336_vm0 = vcmask (!%p930_p9), 7168   ;;  %v1395_v0 = vmov (!%p930_p9), 0.0  }
  0xa2   : > { %331 = sbr.rel (%p930_p9) target bundleno = 169 (0xa9), region = 52  ;;  %332 = vst [vmem:[#allocation2] sm:$0xff] (!%p930_p9), %v1395_v0  ;;  %333 = vst [vmem:[#allocation2 + $0x8] sm:$0xff] (!%p930_p9), %v1395_v0 }
  0xa3   : > { %334 = vst [vmem:[#allocation2 + $0x10] sm:$0xff] (!%p930_p9), %v1395_v0  ;;  %335 = vst [vmem:[#allocation2 + $0x18] sm:$0xff] (!%p930_p9), %v1395_v0 }
  0xa4   : > { %341 = vst [vmem:[#allocation5] sm:$0x1] (!%p930_p9), %v1395_v0  ;;  %337 = vst.msk [vmem:[#allocation3] sm:$0xff] (!%p930_p9), %vm336_vm0, %v1395_v0 }
  0xa5   : > { %338 = vst.msk [vmem:[#allocation3 + $0x8] sm:$0xff] (!%p930_p9), %vm336_vm0, %v1395_v0  ;;  %339 = vst.msk [vmem:[#allocation4] sm:$0xff] (!%p930_p9), %vm336_vm0, %v1395_v0 }
  0xa6   : > { %340 = vst.msk [vmem:[#allocation4 + $0x8] sm:$0xff] (!%p930_p9), %vm336_vm0, %v1395_v0 }
  0xa9 PF: > { %v344_v1 = vld [vmem:[%s1729_s13] sm:$0xff]   ;;  %v346_v2 = vld [vmem:[%s1729_s13 + $0x8] sm:$0xff]   ;;  %v348_v6 = vld [vmem:[%s1729_s13 + $0x10] sm:$0xff]   ;;  %vm512_vm3 = vcmask 7168   ;;  %s1898_s6 = sld [smem:[#allocation19_spill]] }
  0xaa   : > { %v526_v3 = vunpack.c.l.bf16 %v344_v1  ;;  %v527_v4 = vunpack.c.h.bf16 %v344_v1  ;;  %v528_v5 = vunpack.c.l.bf16 %v346_v2  ;;  %974 = vmatprep.subr.bf16.mxu0 %v344_v1  ;;  %v529_v8 = vunpack.c.h.bf16 %v346_v2  ;;  %v342_v9 = vld [vmem:[%s276_s20] sm:$0xff]   ;;  %v352_v20 = vld [vmem:[%s1729_s13 + $0x20] sm:$0xff]   ;;  %v354_v29 = vld [vmem:[%s1729_s13 + $0x28] sm:$0xff]  }
  0xab   : > { %975 = vmatpush3.bf16.msra.mxu0 %v344_v1  ;;  %v530_v11 = vunpack.c.l.bf16 %v348_v6  ;;  %v350_v12 = vld [vmem:[%s1729_s13 + $0x18] sm:$0xff]   ;;  %v531_v14 = vunpack.c.h.bf16 %v348_v6  ;;  %v1740_v15 = vunpack.c.l.bf16 %v342_v9  ;;  %v1742_v16 = vunpack.c.h.bf16 %v342_v9  ;;  %990 = vmatprep.mubr.bf16.mxu0 %v342_v9  ;;  %v356_v35 = vld [vmem:[%s1729_s13 + $0x30] sm:$0xff]  }
  0xac   : > { %v542_v7 = vadd.f32 %v527_v4, %v526_v3  ;;  %976 = vmatprep.subr.bf16.mxu0 %v346_v2  ;;  %v532_v18 = vunpack.c.l.bf16 %v350_v12  ;;  %v533_v23 = vunpack.c.h.bf16 %v350_v12  ;;  %v534_v27 = vunpack.c.l.bf16 %v352_v20  ;;  %v358_v40 = vld [vmem:[%s1729_s13 + $0x38] sm:$0xff]   ;;  %v525_v4 = vld [vmem:[#allocation5] sm:$0x1] }
  0xad   : > { %v362_v19 = vand.u32 2147483647, %v1740_v15  ;;  %v363_v21 = vand.u32 2147483647, %v1742_v16  ;;  %v535_v32 = vunpack.c.h.bf16 %v352_v20  ;;  %v536_v34 = vunpack.c.l.bf16 %v354_v29 }
  0xae   : > { %v543_v10 = vadd.f32 %v542_v7, %v528_v5  ;;  %v537_v37 = vunpack.c.h.bf16 %v354_v29  ;;  %v538_v39 = vunpack.c.l.bf16 %v356_v35  ;;  %v539_v42 = vunpack.c.h.bf16 %v356_v35 }
  0xaf   : > { %977 = vmatpush3.bf16.msra.mxu0 %v346_v2  ;;  %v364_v24 = vsub.f32 0.0, %v362_v19  ;;  %v365_v25 = vsub.f32 0.0, %v363_v21  ;;  %v540_v45 = vunpack.c.l.bf16 %v358_v40  ;;  %v541_v49 = vunpack.c.h.bf16 %v358_v40  ;;  %v505_v21 = vld [vmem:[#allocation3 + $0x8] sm:$0xff]  ;;  %p940_p0 = scmp.ne.s32.totalorder %s1898_s6, 1 }
  0xb0   : > { %v544_v13 = vadd.f32 %v543_v10, %v529_v8  ;;  %978 = vmatprep.subr.bf16.mxu0 %v348_v6  ;;  %vm382_vm1 = vcmp.ge.f32.partialorder %v1740_v15, 0.0  ;;  %vm383_vm2 = vcmp.ge.f32.partialorder %v1742_v16, 0.0  ;;  %v370_v60 = vmax.f32 %v1740_v15, 0.0  ;;  %v504_v15 = vld [vmem:[#allocation3] sm:$0xff] }
  0xb1   : > { %v366_v28 = vmul.f32 1.442695, %v364_v24  ;;  %v368_v30 = vmul.f32 1.442695, %v365_v25  ;;  %v371_v3 = vmax.f32 %v1742_v16, 0.0  ;;  %v516_v16 = vld [vmem:[#allocation4 + $0x8] sm:$0xff] }
  0xb2   : > { %v545_v17 = vadd.f32 %v544_v13, %v530_v11  ;;  %v397_v24 = vld [vmem:[#allocation2 + $0x10] sm:$0xff]  ;;  %v395_v25 = vld [vmem:[#allocation2] sm:$0xff]  ;;  %vm572_vm4 = vcmask (!%p940_p0), 130048  }
  0xb3   : > { %979 = vmatpush3.bf16.msra.mxu0 %v348_v6  ;;  %1144 = vpow2.f32 %v366_v28 }
  0xb4   : > { %v546_v22 = vadd.f32 %v545_v17, %v531_v14  ;;  %980 = vmatprep.subr.bf16.mxu0 %v350_v12  ;;  %1146 = vpow2.f32 %v368_v30  ;;  %v396_v30 = vld [vmem:[#allocation2 + $0x8] sm:$0xff] }
  0xb6   : > { %v547_v26 = vadd.f32 %v546_v22, %v532_v18 }
  0xb7   : > { %981 = vmatpush3.bf16.msra.mxu0 %v350_v12  ;;  %v515_v12 = vld [vmem:[#allocation4] sm:$0xff] }
  0xb8   : > { %v548_v31 = vadd.f32 %v547_v26, %v533_v23  ;;  %982 = vmatprep.subr.bf16.mxu0 %v352_v20 }
  0xba   : > { %v549_v33 = vadd.f32 %v548_v31, %v534_v27  ;;  %v398_v27 = vld [vmem:[#allocation2 + $0x18] sm:$0xff] }
  0xbb   : > { %983 = vmatpush3.bf16.msra.mxu0 %v352_v20 }
  0xbc   : > { %v550_v36 = vadd.f32 %v549_v33, %v535_v32  ;;  %984 = vmatprep.subr.bf16.mxu0 %v354_v29 }
  0xbd   : > { %v1145_v43 = vpop.eup %1144 }
  0xbe   : > { %v551_v38 = vadd.f32 %v550_v36, %v536_v34  ;;  %v1147_v46 = vpop.eup %1146  ;;  %v372_v47 = vadd.f32 1.0, %v1145_v43  ;;  %v569_v36 = vld [vmem:[%s1706_s2] sm:$0xff] (!%p940_p0) }
  0xbf   : > { %985 = vmatpush3.bf16.msra.mxu0 %v354_v29  ;;  %v373_v50 = vadd.f32 1.0, %v1147_v46  ;;  %v941_v46 = vld [vmem:[%s325_s4] ss:$0 sm:$0xff] (!%p940_p0) }
  0xc0   : > { %v552_v41 = vadd.f32 %v551_v38, %v537_v37  ;;  %986 = vmatprep.subr.bf16.mxu0 %v356_v35  ;;  %1148 = vrcp.f32 %v372_v47  ;;  %v570_v37 = vld [vmem:[%s1706_s2 + $0x8] sm:$0xff] (!%p940_p0) }
  0xc1   : > { %1150 = vrcp.f32 %v373_v50  ;;  %v576_v43 = vsel (!%p940_p0), %vm572_vm4, %v570_v37, -inf }
  0xc2   : > { %v553_v44 = vadd.f32 %v552_v41, %v538_v39  ;;  %1152 = vlog2.f32 %v372_v47  ;;  %v573_v39 = vsel (!%p940_p0), %vm572_vm4, %v569_v36, -inf }
  0xc3   : > { %987 = vmatpush3.bf16.msra.mxu0 %v356_v35  ;;  %1154 = vlog2.f32 %v373_v50 }
  0xc4   : > { %v554_v48 = vadd.f32 %v553_v44, %v539_v42  ;;  %988 = vmatprep.subr.bf16.mxu0 %v358_v40 }
  0xc6   : > { %v555_v51 = vadd.f32 %v554_v48, %v540_v45  ;;  %v595_v45 = vlaneseq (!%p940_p0) }
  0xc7   : > { %989 = vmatpush3.bf16.msra.mxu0 %v358_v40  ;;  %v1396_v40 = vmov (!%p940_p0), 0  }
  0xc8   : > { %v556_v52 = vadd.f32 %v555_v51, %v541_v49  ;;  %1157 = vset.pattern.permute.xlu1 (!%p940_p0), %v1396_v40  ;;  %1156 = vset.pattern.permute.xlu0 (!%p940_p0), %v1396_v40  ;;  %v596_v47 = vshrl.u32 (!%p940_p0), %v595_v45, 7  ;;  %v1397_v49 = vmov (!%p940_p0), 1.0|1.0  }
  0xca   : > { %v557_v53 = vrot.slane %v556_v52, 4  ;;  %v1149_v56 = vpop.eup %1148  ;;  %v597_v48 = vadd.s32 (!%p940_p0), 8, %v596_v47  ;;  %vm602_vm5 = vcmp.eq.s32.totalorder (!%p940_p0), %v596_v47, %v941_v46 }
  0xcb   : > { %v1151_v57 = vpop.eup %1150  ;;  %v384_v59 = vsub.f32 1.0, %v1149_v56 }
  0xcc   : > { %v558_v54 = vadd.f32 %v557_v53, %v556_v52  ;;  %v1153_v61 = vpop.eup %1152  ;;  %v385_v62 = vsub.f32 1.0, %v1151_v57  ;;  %vm603_vm6 = vcmp.eq.s32.totalorder (!%p940_p0), %v597_v48, %v941_v46 }
  0xcd   : > { %v1155_v63 = vpop.eup %1154  ;;  %v386_v1 = vsel %vm382_vm1, %v1149_v56, %v384_v59  ;;  %v375_v2 = vmul.f32 0.6931472, %v1153_v61  ;;  %vm1001_vm7 = vmpackc.low (!%p940_p0), %vm603_vm6, %vm602_vm5 }
  0xce   : > { %v559_v55 = vrot.slane %v558_v54, 2  ;;  %v387_v5 = vsel %vm383_vm2, %v1151_v57, %v385_v62  ;;  %517 = vadd.xlane.f32.xlu1 %v386_v1  ;;  %v377_v6 = vmul.f32 0.6931472, %v1155_v63  ;;  %1002 = vmatprep.subr.msk.bf16.mxu0 (!%p940_p0), %vm1001_vm7, %v1397_v49 }
  0xcf   : > { %v388_v8 = vpack.c.bf16 %v387_v5, %v386_v1  ;;  %v378_v9 = vadd.f32 %v375_v2, %v370_v60 }
  0xd0   : > { %v560_v58 = vadd.f32 %v559_v55, %v558_v54  ;;  %v379_v11 = vadd.f32 %v377_v6, %v371_v3 }
  0xd1   : > { %991 = vmatmul.mubr.bf16.vlgmr.msra.gmra.mrb[0].mxu0 %v388_v8  ;;  %506 = vadd.xlane.f32.xlu0 %v378_v9 }
  0xd2   : > { %v561_v0 = vrot.slane %v560_v58, 1  ;;  %519 = vadd.xlane.f32.xlu1 %v387_v5  ;;  %1004 = vmatpush3.bf16.msk.msra.mxu0 (!%p940_p0), %vm1001_vm7, %v1397_v49 }
  0xd4   : > { %v562_v7 = vadd.f32 %v561_v0, %v560_v58 }
  0xd5   : > { %508 = vadd.xlane.f32.xlu0 %v379_v11 }
  0xd6   : > { %v563_v10 = vadd.f32 %v562_v7, %v525_v4 }
  0xd8   : > { %564 = vst [vmem:[#allocation5] sm:$0x1] %v563_v10 }
  0xd9   : > { %574 = vmax.xlane.f32.xlu0 (!%p940_p0), %v573_v39 }
  0xdd   : > { %577 = vmax.xlane.f32.xlu0 (!%p940_p0), %v576_v43 }
  0xdf   : > { %v952_v2 = vld [vmem:[#allocation5] ss:$0 sm:$0xff] (!%p940_p0) }
 0x15b   : > { %v518_v13 = vpop.xlane.xlu1 %517 }
 0x15c   : > { %v521_v14 = vadd.f32 %v518_v13, %v515_v12 }
 0x15e   : > { %523 = vst.msk [vmem:[#allocation4] sm:$0xff] %vm512_vm3, %v521_v14  ;;  %v507_v17 = vpop.xlane.xlu0 %506 }
 0x15f   : > { %v510_v18 = vadd.f32 %v507_v17, %v504_v15  ;;  %v520_v19 = vpop.xlane.xlu1 %519 }
 0x160   : > { %v522_v20 = vadd.f32 %v520_v19, %v516_v16 }
 0x161   : > { %513 = vst.msk [vmem:[#allocation3] sm:$0xff] %vm512_vm3, %v510_v18 }
 0x162   : > { %524 = vst.msk [vmem:[#allocation4 + $0x8] sm:$0xff] %vm512_vm3, %v522_v20  ;;  %v509_v22 = vpop.xlane.xlu0 %508 }
 0x163   : > { %v511_v23 = vadd.f32 %v509_v22, %v505_v21 }
 0x165   : > { %514 = vst.msk [vmem:[#allocation3 + $0x8] sm:$0xff] %vm512_vm3, %v511_v23  ;;  %v697_v50 = vld [vmem:[#allocation4] sm:$0xff] (!%p940_p0) }
 0x166   : > { %v950_v51 = vadd.f32 (!%p940_p0), -32.0, %v697_v50  ;;  %v575_v52 = vpop.xlane.xlu0 (!%p940_p0), %574 }
 0x167   : > { %v579_v53 = vsub.f32 (!%p940_p0), %v569_v36, %v575_v52 }
 0x168   : > { %v693_v42 = vld [vmem:[#allocation3] sm:$0xff] (!%p940_p0)  ;;  %722 = vperm.xlu0 (!%p940_p0), %1156, %v950_v51  }
 0x169   : > { %v698_v38 = vld [vmem:[#allocation4 + $0x8] sm:$0xff] (!%p940_p0)  ;;  %v948_v44 = vadd.f32 (!%p940_p0), -44.36142, %v693_v42  ;;  %v581_v54 = vmul.f32 (!%p940_p0), 1.442695, %v579_v53 }
 0x16a   : > { %v951_v41 = vadd.f32 (!%p940_p0), -32.0, %v698_v38  ;;  %v578_v55 = vpop.xlane.xlu0 (!%p940_p0), %577 }
 0x16b   : > { %1158 = vpow2.f32 (!%p940_p0), %v581_v54  ;;  %v580_v56 = vsub.f32 (!%p940_p0), %v570_v37, %v578_v55 }
 0x16c   : > { %727 = vperm.xlu1 (!%p940_p0), %1157, %v951_v41   ;;  %v694_v62 = vld [vmem:[#allocation3 + $0x8] sm:$0xff] (!%p940_p0) }
 0x16d   : > { %v583_v57 = vmul.f32 (!%p940_p0), 1.442695, %v580_v56  ;;  %v949_v63 = vadd.f32 (!%p940_p0), -44.36142, %v694_v62 }
 0x16f   : > { %1160 = vpow2.f32 (!%p940_p0), %v583_v57 }
 0x170   : > { %707 = vperm.xlu1 (!%p940_p0), %1157, %v948_v44  }
 0x175   : > { %v1159_v58 = vpop.eup (!%p940_p0), %1158 }
 0x176   : > { %998 = vmatprep.mubr.msk.f32.mxu0 (!%p940_p0), %vm572_vm4, %v1159_v58  ;;  %v585_v59 = vsel (!%p940_p0), %vm572_vm4, %v1159_v58, 0.0 }
 0x179   : > { %v1161_v60 = vpop.eup (!%p940_p0), %1160 }
 0x17a   : > { %v588_v61 = vsel (!%p940_p0), %vm572_vm4, %v1161_v60, 0.0 }
 0x194   : > { %586 = vadd.xlane.f32.xlu1 (!%p940_p0), %v585_v59 }
 0x198   : > { %589 = vadd.xlane.f32.xlu1 (!%p940_p0), %v588_v61 }
 0x1a4   : > { %v992_v26 = vpop.f32.mrb[0].mxu0  ;;  %568 = sbr.rel (%p940_p0) target bundleno = 643 (0x283), region = 56 }
 0x1a5   : > { %v498_v28 = vadd.f32 %v992_v26, %v397_v24  ;;  %v481_v29 = vpop.f32.mrb[1].mxu0  ;;  %999 = vmatmul.mubr.msk.f32.vlgmr.msra.gmra.mrb[0].mxu0 (!%p940_p0), %vm572_vm4, %v1161_v60 }
 0x1a6   : > { %v496_v31 = vadd.f32 %v481_v29, %v395_v25  ;;  %v993_v32 = vpop.f32.mrb[2].mxu0 }
 0x1a7   : > { %502 = vst [vmem:[#allocation2 + $0x10] sm:$0xff] %v498_v28  ;;  %v499_v33 = vadd.f32 %v993_v32, %v398_v27  ;;  %v484_v34 = vpop.f32.mrb[3].mxu0 }
 0x1a8   : > { %500 = vst [vmem:[#allocation2] sm:$0xff] %v496_v31  ;;  %v497_v35 = vadd.f32 %v484_v34, %v396_v30 }
 0x1a9   : > { %503 = vst [vmem:[#allocation2 + $0x18] sm:$0xff] %v499_v33  ;;  %712 = vperm.xlu1 (!%p940_p0), %1157, %v949_v63  }
 0x1aa   : > { %501 = vst [vmem:[#allocation2 + $0x8] sm:$0xff] %v497_v35 }
 0x1ae   : > { %v703_v10 = vld [vmem:[#allocation2 + $0x10] sm:$0xff] }
 0x1af   : > { %v740_v12 = vmul.f32 2.0, %v703_v10  ;;  %v701_v18 = vld [vmem:[#allocation2] sm:$0xff] }
 0x1b0   : > { %v704_v11 = vld [vmem:[#allocation2 + $0x18] sm:$0xff] }
 0x1b1   : > { %v741_v13 = vmul.f32 2.0, %v704_v11  ;;  %v702_v14 = vld [vmem:[#allocation2 + $0x8] sm:$0xff]  ;;  %v742_v16 = vadd.f32 1.0, %v740_v12 }
 0x1b3   : > { %v743_v19 = vadd.f32 1.0, %v741_v13 }
 0x1e7   : > { %v723_v1 = vpop.permute.xlu0 %722 }
 0x1e8   : > { %v736_v4 = vadd.f32 %v952_v2, %v723_v1 }
 0x1ea   : > { %v738_v7 = vadd.f32 1.0, %v736_v4 }
 0x1eb   : > { %v728_v0 = vpop.permute.xlu1 %727 }
 0x1ec   : > { %v737_v5 = vadd.f32 %v952_v2, %v728_v0  ;;  %1162 = vrcp.f32 %v738_v7 }
 0x1ee   : > { %v739_v8 = vadd.f32 1.0, %v737_v5 }
 0x1ef   : > { %v708_v3 = vpop.permute.xlu1 %707 }
 0x1f0   : > { %1164 = vrcp.f32 %v739_v8  ;;  %v715_v22 = vsub.f32 %v708_v3, %v701_v18 }
 0x1f2   : > { %v717_v33 = vmul.f32 0.0052083335, %v715_v22 }
 0x1f6   : > { %v1163_v17 = vpop.eup %1162 }
 0x1f7   : > { %v746_v24 = vmul.f32 %v1163_v17, %v742_v16 }
 0x1f9   : > { %v748_v35 = vsub.f32 1.0, %v746_v24 }
 0x1fa   : > { %v1165_v20 = vpop.eup %1164 }
 0x1fb   : > { %v747_v26 = vmul.f32 %v1165_v20, %v743_v19 }
 0x1fd   : > { %v749_v36 = vsub.f32 1.0, %v747_v26 }
 0x221   : > { %v587_v6 = vpop.xlane.xlu1 %586 }
 0x225   : > { %v590_v9 = vpop.xlane.xlu1 %589 }
 0x226   : > { %1166 = vrcp.f32 %v590_v9 }
 0x227   : > { %1168 = vrcp.f32 %v587_v6 }
 0x229   : > { %v713_v15 = vpop.permute.xlu1 %712 }
 0x22a   : > { %v716_v21 = vsub.f32 %v713_v15, %v702_v14 }
 0x22c   : > { %v718_v31 = vmul.f32 0.0052083335, %v716_v21 }
 0x230   : > { %v1167_v28 = vpop.eup %1166 }
 0x231   : > { %v1169_v30 = vpop.eup %1168 }
 0x278   : > { %v1000_v23 = vpop.f32.mrb[0].mxu0 }
 0x279   : > { %v690_v25 = vsub.f32 0.0, %v1000_v23  ;;  %v680_v27 = vpop.f32.mrb[1].mxu0 }
 0x27a   : > { %v689_v29 = vsub.f32 0.0, %v680_v27 }
 0x27b   : > { %v692_v32 = vmul.f32 %v1167_v28, %v690_v25 }
 0x27c   : > { %v691_v34 = vmul.f32 %v1169_v30, %v689_v29 }
 0x27d   : > { %v751_v37 = vadd.f32 %v718_v31, %v692_v32 }
 0x27e   : > { %v750_v38 = vadd.f32 %v717_v33, %v691_v34 }
 0x27f   : > { %v753_v39 = vadd.f32 %v751_v37, %v749_v36 }
 0x280   : > { %v752_v40 = vadd.f32 %v750_v38, %v748_v35 }
 0x281   : > { %755 = vst [vmem:[%s1731_s0 + $0x8] sm:$0xff] %v753_v39 }
 0x282   : > { %754 = vst [vmem:[%s1731_s0] sm:$0xff] %v752_v40 }
 0x283 PF: > { %s959_s18 = sshll.u32 %s1374_s22, 8  ;;  %s1899_s10 = sld [smem:[#allocation27_spill]] }
 0x284   : > { %s770_s17 = sshll.u32 %s1731_s0, 4  ;;  %s757_s28 = scalar_lea.sflag [#allocation8], %s1702_s27  ;;  %s1777_s17 = int_to_ptr.vmem [resolvable:$true] %s770_s17 }
 0x285   : > { %s1260_s29 = scalar_lea.vmem %s1777_s17, 256  ;;  %p1900_p13 = scmp.ne.s32.totalorder %s1882_s12, 0 }
 0x286   : > { %p1261_p3 = scmp.ne.s32.totalorder %s1777_s17, %s1260_s29  ;;  %s1398_s26 = smov [#allocation12]  }
 0x287   : > { %s1264_s20 = sshll.u32 %s1398_s26, 4  ;;  %s1265_s20 = int_to_ptr.vmem [resolvable:$false] %s1264_s20 }
 0x288   : > { %p1262_p11 = pnand %p1261_p3, %p1900_p13  ;;  %s1266_s22 = scalar_lea.vmem %s1265_s20, 512 }
 0x289   : > { %s1774_s2 = scalar_lea.hbm %s1899_s10, %s959_s18  ;;  %p1267_p2 = scmp.lt.s32.totalorder %s1777_s17, %s1265_s20 }
 0x28a   : > { %p1263_p5 = pneg %p1262_p11  ;;  %p1268_p1 = scmp.lt.s32.totalorder %s1266_s22, %s1260_s29 }
 0x28c   : > { %p1269_p7 = por %p1268_p1, %p1267_p2 }
 0x28e   : > { %p1270_p4 = pnand %p1269_p7, %p1263_p5 }
 0x290   : > { %1273 = shalt.err (!%p1270_p4)
}
 0x291   : > { %s1274_s8 = scalar_lea.hbm %s1774_s2, 256  ;;  %s1278_s30 = scalar_lea.hbm %s1899_s10, 512 }
 0x292   : > { %p1275_p6 = scmp.ne.s32.totalorder %s1774_s2, %s1274_s8  ;;  %p1279_p10 = scmp.lt.u32.totalorder %s1774_s2, %s1899_s10 }
 0x293   : > { %p1280_p9 = scmp.lt.u32.totalorder %s1278_s30, %s1274_s8  ;;  %p1282_p3 = scmp.lt.u32.totalorder %s1274_s8, %s1774_s2 }
 0x294   : > { %p1276_p12 = pnand %p1275_p6, %p1900_p13 }
 0x295   : > { %p1281_p0 = por %p1280_p9, %p1279_p10 }
 0x296   : > { %p1277_p8 = pneg %p1276_p12 }
 0x297   : > { %p1283_p11 = por %p1282_p3, %p1281_p0 }
 0x299   : > { %p1284_p5 = pnand %p1283_p11, %p1277_p8 }
 0x29b   : > { %1287 = shalt.err (!%p1284_p5)
}
 0x29c   : > { %s1399_s0 = smov 128   ;;  %s1400_s21 = smov 8  }
 0x29d   : > { %1011 = dma.vmem_to_hbm [thread:$0]  (%p1900_p13), %s1777_s17, 256, %s1774_s2, %s757_s28, %s1399_s0, %s1399_s0, %s1400_s21  }
 0x29e PF: > { %s1901_s6 = sld [smem:[#allocation17_spill]]  ;;  %s1902_s9 = sld [smem:[#allocation24_spill]] }
 0x29f   : > { %p1028_p2 = scmp.ge.s32.totalorder %s1386_s25, 2 }
 0x2a4   : > { %s785_s15 = sand.u32 1, %s1901_s6   ;;  %p1903_p1 = scmp.ne.s32.totalorder %s1902_s9, 0 }
 0x2a5   : > { %s786_s18 = scalar_lea.sflag [#allocation8], %s785_s15 }
 0x2a6   : > { %p1024_p7 = pnand %p1028_p2, %p1903_p1 }
 0x2a8   : > { %1341 = dma.done.wait (!%p1024_p7), %s786_s18, 256  }
 0x2a9   : > { %1343 = vsyncadd (!%p1024_p7), %s786_s18, 4294967040  ;;  %s23_s25 = sadd.s32 1, %s1386_s25   ;;  %s1904_s5 = sld [smem:[#allocation16_spill]] }
 0x2aa   : > { %p20_p4 = scmp.ge.s32.totalorder %s23_s25, 6   ;;  %s1905_s17 = sld [smem:[#allocation22_spill]] }
 0x2ab   : > { %s1906_s12 = sld [smem:[#allocation18_spill]]  ;;  %s1907_s20 = sld [smem:[#allocation23_spill]] }
 0x2ac   : > { %s1908_s27 = sld [smem:[#allocation20_spill]]  ;;  %s1909_s11 = sld [smem:[#allocation21_spill]] }
 0x2ad   : > { %s1910_s15 = smov %s1350_s16  ;;  %s1912_s18 = smov %s1362_s19 }
 0x2ae   : > { %s1914_s21 = smov %s1378_s23  ;;  %s1915_s22 = smov %s1382_s24 }
 0x2af   : > { %s1911_s16 = smov %s1904_s5  ;;  %22 = sbr.rel (!%p20_p4) target bundleno = 15 (0xf), region = 116 }
 0x2b1   : > { %s1913_s19 = smov %s1906_s12 }
 0x2b2   : > { %s1916_s23 = smov %s1908_s27  ;;  %s1917_s24 = smov %s1909_s11 }
 0x2b6   :  { %791 = vsyncpa [#allocation7], 1 }
 0x2b7   :  { %793 = vsyncpa [#allocation7 + $0x1], 1 }
 0x2b8   :  { %794 = vsyncpa [#allocation10], 1 }
 0x2b9   :  { %796 = vsyncpa [#allocation10 + $0x1], 1 }
 0x2ba   :  { %797 = vsyncpa [#allocation8], 1 }
 0x2bb   :  { %799 = vsyncpa [#allocation8 + $0x1], 1 }

</bundles_post_ra>
